<compile_context>
chip_gen: v5e
topology: v5e:2x2
jax: 0.10.0
libtpu: 0.0.40
codegen_flags: <defaults>
</compile_context>

<pallas_src>
import functools

import numpy as np
import jax
import jax.numpy as jnp
from jax import lax
from jax.experimental import pallas as pl
from jax.experimental.pallas import tpu as pltpu

_MiB = 1024 * 1024
_COMBINED_M_MAX_BYTES = 4 * _MiB   # gate on size of the combined window matrix


def _vmem_capacity_bytes():
    try:
        return int(getattr(pltpu.get_tpu_info(), "vmem_capacity_bytes", 64 * _MiB))
    except Exception:
        return 64 * _MiB


def _round_up(x, m):
    return -(-x // m) * m


def _window_matrices(H, W, Ho, Wo, K, s, p):
    """Row/col window matrices over the UNPADDED input with the reciprocal of
    the valid-element count folded in (divisor = #valid, as in the CUDA ref)."""
    A = np.zeros((Ho, H), np.float32)
    for o in range(Ho):
        for kh in range(K):
            h = o * s - p + kh
            if 0 <= h < H:
                A[o, h] = 1.0
    Bm = np.zeros((W, Wo), np.float32)
    for o in range(Wo):
        for kw in range(K):
            w = o * s - p + kw
            if 0 <= w < W:
                Bm[w, o] = 1.0
    nh = A.sum(axis=1)
    nw = Bm.sum(axis=0)
    if np.any(nh == 0) or np.any(nw == 0):
        raise ValueError("avg_pool2d: a pooling window has zero valid elements "
                         "(padding too large for kernel_size)")
    A /= nh[:, None]      # fold 1/nh into rows of A
    Bm /= nw[None, :]     # fold 1/nw into columns of B
    return A, Bm


def _combined_kernel(x_ref, m_ref, o_ref):
    # x_ref: (tc, H*W) lane-dense input slab
    # m_ref: (H*W, Ho*Wo) combined window matrix (1/count folded in)
    # o_ref: (tc, Ho*Wo) lane-dense output slab
    o_ref[...] = jnp.dot(x_ref[...], m_ref[...],
                         preferred_element_type=jnp.float32).astype(o_ref.dtype)


def _separable_kernel(x_ref, a_ref, b_ref, o_ref):
    # x_ref: (tc, H, W); a_ref: (Ho, H); b_ref: (W, Wo); o_ref: (tc, Ho, Wo)
    # Per-channel 2D matmuls: out[c] = A @ x[c] @ B (no broadcast of A).
    a = a_ref[...]
    b = b_ref[...]

    def body(c, carry):
        t = jnp.dot(a, x_ref[c], preferred_element_type=jnp.float32)        # (Ho, W)
        o_ref[c] = jnp.dot(t, b, preferred_element_type=jnp.float32).astype(o_ref.dtype)
        return carry

    lax.fori_loop(0, x_ref.shape[0], body, 0, unroll=True)


@functools.partial(jax.jit, static_argnames=("kernel_size", "stride", "padding"))
def avg_pool2d(x, *, kernel_size, stride=None, padding=0):
    """Average pooling matching the reference CUDA kernel (divide by valid count)."""
    if stride is None or stride <= 0:
        stride = kernel_size
    B, C, H, W = x.shape
    K, s, p = kernel_size, stride, padding
    Ho = (H + 2 * p - K) // s + 1
    Wo = (W + 2 * p - K) // s + 1
    if Ho <= 0 or Wo <= 0:
        raise ValueError("avg_pool2d: non-positive output spatial size")

    A, Bm = _window_matrices(H, W, Ho, Wo, K, s, p)

    n = B * C
    HW, HoWo = H * W, Ho * Wo

    # Per-generation VMEM budget: v5e/v6e have 128 MiB physical VMEM; v7x only
    # 64 MiB per TensorCore, so keep per-step footprint (and limit) smaller there.
    cap = _vmem_capacity_bytes()
    if cap >= 100 * _MiB:
        step_budget, vmem_cap_limit = 24 * _MiB, 96 * _MiB
    else:
        step_budget, vmem_cap_limit = 12 * _MiB, 44 * _MiB

    m_bytes = 4 * HW * HoWo
    per_row_c = 4 * 2 * (HW + HoWo)            # double-buffered input + output row
    use_combined = (m_bytes <= _COMBINED_M_MAX_BYTES and
                    2 * m_bytes + 8 * per_row_c <= step_budget)

    if use_combined:
        # ---- main path: one lane-dense GEMM per grid step -------------------
        tc = max((step_budget - 2 * m_bytes) // per_row_c, 8)
        if n > 8:
            tc = min(tc, _round_up(-(-n // 2), 8))   # >=2 grid steps (v7x megacore)
        tc = (tc // 8) * 8                           # sublane-aligned block rows
        if tc >= n:
            tc = n
        grid = (pl.cdiv(n, tc),)
        step_bytes = 2 * m_bytes + per_row_c * tc
        vmem_limit = int(min(vmem_cap_limit, max(32 * _MiB, step_bytes + 8 * _MiB)))

        # M[h*W+w, ho*Wo+wo] = A[ho,h] * B[w,wo]  (reciprocal already folded in)
        M = np.kron(A.T, Bm)                         # (H*W, Ho*Wo)
        x2 = x.reshape(n, HW)                        # free row-major reshape
        flops = 2 * n * HW * HoWo
        bytes_accessed = 4 * n * (HW + HoWo) + m_bytes

        out = pl.pallas_call(
            _combined_kernel,
            out_shape=jax.ShapeDtypeStruct((n, HoWo), x.dtype),
            grid=grid,
            in_specs=[
                pl.BlockSpec((tc, HW), lambda i: (i, 0)),
                pl.BlockSpec((HW, HoWo), lambda i: (0, 0)),
            ],
            out_specs=pl.BlockSpec((tc, HoWo), lambda i: (i, 0)),
            compiler_params=pltpu.CompilerParams(
                dimension_semantics=("parallel",),
                vmem_limit_bytes=vmem_limit),
            cost_estimate=pl.CostEstimate(
                flops=flops, transcendentals=0, bytes_accessed=bytes_accessed),
        )(x2, jnp.asarray(M))
    else:
        # ---- fallback: separable per-channel matmuls (large spatial dims) ----
        fixed = 8 * (Ho * H + W * Wo)
        per_row_s = 4 * (2 * HW + 2 * HoWo + Ho * W)
        tc = (step_budget - fixed) // per_row_s
        tc = max(min(tc, 16), 1)                     # short unrolled channel loop
        if n > 1:
            tc = min(tc, -(-n // 2))                 # >=2 grid steps (v7x megacore)
        tc = min(tc, n)
        grid = (pl.cdiv(n, tc),)
        step_bytes = fixed + per_row_s * tc
        vmem_limit = int(min(vmem_cap_limit, max(32 * _MiB, step_bytes + 8 * _MiB)))

        x3 = x.reshape(n, H, W)
        flops = 2 * n * (Ho * H * W + Ho * W * Wo)
        bytes_accessed = 4 * n * (HW + HoWo) + 4 * (Ho * H + W * Wo)

        out = pl.pallas_call(
            _separable_kernel,
            out_shape=jax.ShapeDtypeStruct((n, Ho, Wo), x.dtype),
            grid=grid,
            in_specs=[
                pl.BlockSpec((tc, H, W), lambda i: (i, 0, 0)),
                pl.BlockSpec((Ho, H), lambda i: (0, 0)),
                pl.BlockSpec((W, Wo), lambda i: (0, 0)),
            ],
            out_specs=pl.BlockSpec((tc, Ho, Wo), lambda i: (i, 0, 0)),
            compiler_params=pltpu.CompilerParams(
                dimension_semantics=("parallel",),
                vmem_limit_bytes=vmem_limit),
            cost_estimate=pl.CostEstimate(
                flops=flops, transcendentals=0, bytes_accessed=bytes_accessed),
        )(x3, jnp.asarray(A), jnp.asarray(Bm))

    return out.reshape(B, C, Ho, Wo)


def _ref_avg_pool(x, K, s, p):
    """Pure-JAX reference with divisor-by-valid-count semantics."""
    summed = lax.reduce_window(
        x, 0.0, lax.add,
        window_dimensions=(1, 1, K, K), window_strides=(1, 1, s, s),
        padding=[(0, 0), (0, 0), (p, p), (p, p)])
    ones = jnp.ones((1, 1) + x.shape[2:], jnp.float32)
    counts = lax.reduce_window(
        ones, 0.0, lax.add,
        window_dimensions=(1, 1, K, K), window_strides=(1, 1, s, s),
        padding=[(0, 0), (0, 0), (p, p), (p, p)])
    return summed / counts


if __name__ == "__main__":
    key = jax.random.PRNGKey(0)

    configs = [
        # (B, C, H, W, kernel_size, stride, padding)
        (2, 4, 16, 16, 3, 2, 1),
        (2, 4, 32, 32, 2, 2, 0),
        (2, 5, 16, 16, 2, 2, 0),   # B*C not a multiple of 8 -> partial last block
    ]

    for (B, C, H, W, K, s, p) in configs:
        key, sub = jax.random.split(key)
        x = jax.random.normal(sub, (B, C, H, W), dtype=jnp.float32)

        out = jax.block_until_ready(avg_pool2d(x, kernel_size=K, stride=s, padding=p))

        ref = _ref_avg_pool(x, K, s, p)
        assert out.shape == ref.shape, (out.shape, ref.shape)
        np.testing.assert_allclose(np.asarray(out), np.asarray(ref),
                                   rtol=1e-5, atol=1e-5)

    print("KERNEL_OK")
</pallas_src>

<mosaic_0001>
module attributes {stable_mosaic.version = 11 : i64} {
  func.func @_combined_kernel(%arg0: i32, %arg1: memref<8x256xf32, #tpu.memory_space<vmem>>, %arg2: memref<256x64xf32, #tpu.memory_space<vmem>>, %arg3: memref<8x64xf32, #tpu.memory_space<vmem>>) attributes {dimension_semantics = [#tpu.dimension_semantics<parallel>], iteration_bounds = array<i64: 1>, scalar_prefetch = 0 : i64, scratch_operands = 0 : i64, tpu.core_type = #tpu.core_type<tc>, window_params = [{transform_indices = @transform_0, window_bounds = array<i64: 8, 256>}, {pipeline_mode = #tpu.pipeline_mode<synchronous>, transform_indices = @transform_1, window_bounds = array<i64: 256, 64>}, {transform_indices = @transform_2, window_bounds = array<i64: 8, 64>}]} {
    %c0 = arith.constant 0 : index
    %c0_0 = arith.constant 0 : index
    %0 = vector.load %arg1[%c0, %c0_0] : memref<8x256xf32, #tpu.memory_space<vmem>>, vector<8x256xf32>
    %c0_1 = arith.constant 0 : index
    %c0_2 = arith.constant 0 : index
    %1 = vector.load %arg2[%c0_1, %c0_2] : memref<256x64xf32, #tpu.memory_space<vmem>>, vector<256x64xf32>
    %cst = arith.constant dense<0.000000e+00> : vector<8x64xf32>
    %2 = tpu.matmul %0, %1, %cst {dimension_numbers = #tpu.dot_dimension_numbers<[1], [0], [0], [1], [0, 0, 1, 1], [], []>} : vector<8x256xf32>, vector<256x64xf32>, vector<8x64xf32> -> vector<8x64xf32>
    %c0_3 = arith.constant 0 : index
    %c0_4 = arith.constant 0 : index
    %3 = vector.load %arg3[%c0_3, %c0_4] : memref<8x64xf32, #tpu.memory_space<vmem>>, vector<8x64xf32>
    tpu.vector_store %arg3[%c0_3, %c0_4], %2 {strides = array<i32>} : memref<8x64xf32, #tpu.memory_space<vmem>>, vector<8x64xf32>,
    return
  }
  func.func @transform_0(%arg0: i32) -> (i32, i32) {
    %c0_i32 = arith.constant 0 : i32
    %c0_i32_0 = arith.constant 0 : i32
    return %arg0, %c0_i32 : i32, i32
  }
  func.func @transform_1(%arg0: i32) -> (i32, i32) {
    %c0_i32 = arith.constant 0 : i32
    %c0_i32_0 = arith.constant 0 : i32
    %c0_i32_1 = arith.constant 0 : i32
    return %c0_i32, %c0_i32_0 : i32, i32
  }
  func.func @transform_2(%arg0: i32) -> (i32, i32) {
    %c0_i32 = arith.constant 0 : i32
    %c0_i32_0 = arith.constant 0 : i32
    return %arg0, %c0_i32 : i32, i32
  }
}

</mosaic_0001>

<bundles_post_ra>
// kernel: avg_pool2d.1
= control target key start
LH: loop header
LB: loop body
LE: loop exit
PB: predicated region body
PF: predicated region fallthrough
CT: control target
= control target key end

     0   :  { %7 = vsyncpa [#allocation3], 0  ;;  %s137_s12 = smov [#allocation2]   ;;  %s138_s14 = smov 128   ;;  %s167_s0 = inlined_call_operand.vmem [shape: f32[8,256], index: 0, kind: input, shape index: {}]   ;;  %s168_s1 = inlined_call_operand.hbm [shape: f32[256,64], index: 1, kind: input, shape index: {}]   ;;  %s169_s2 = inlined_call_operand.vmem [shape: f32[8,64], index: 2, kind: output, shape index: {}]  }
   0x1   :  { %s14_s11 = sshll.u32 %s168_s1, 4  ;;  %s16_s13 = sshll.u32 %s137_s12, 4  ;;  %s15_s11 = int_to_ptr.hbm [resolvable:$true] %s14_s11  ;;  %s17_s13 = int_to_ptr.vmem [resolvable:$true] %s16_s13 }
   0x2   :  { %s139_s15 = smov 8  }
   0x3   :  { %22 = dma.hbm_to_vmem [thread:$0]  %s15_s11, 4096, %s17_s13, [#allocation3], %s138_s14, %s138_s14, %s139_s15  }
   0x4   :  { %135 = dma.done.wait [#allocation3], 4096  }
   0x5   :  { %136 = vsyncadd [#allocation3], 4294963200  ;;  %v44_v0 = vld [vmem:[#allocation2 + $0x78] sm:$0xff]  ;;  %v43_v2 = vld [vmem:[#allocation2 + $0x70] sm:$0xff]  ;;  %vm101_vm0 = vcmask 523264  }
   0x6   :  { %v60_v1 = vld [vmem:[#allocation2 + $0xf8] sm:$0xff]  ;;  %61 = vmatpush.msra.mxu0 %v44_v0  ;;  %v59_v3 = vld [vmem:[#allocation2 + $0xf0] sm:$0xff]  ;;  %v42_v4 = vld [vmem:[#allocation2 + $0x68] sm:$0xff] }
   0x7   :  { %81 = vmatpush.msra.mxu1 %v60_v1  ;;  %v58_v5 = vld [vmem:[#allocation2 + $0xe8] sm:$0xff]  ;;  %v41_v6 = vld [vmem:[#allocation2 + $0x60] sm:$0xff]  ;;  %v40_v8 = vld [vmem:[#allocation2 + $0x58] sm:$0xff] }
   0x8   :  { %62 = vmatpush.msra.mxu0 %v43_v2  ;;  %v57_v7 = vld [vmem:[#allocation2 + $0xe0] sm:$0xff]  ;;  %v56_v9 = vld [vmem:[#allocation2 + $0xd8] sm:$0xff]  ;;  %v39_v10 = vld [vmem:[#allocation2 + $0x50] sm:$0xff] }
   0x9   :  { %82 = vmatpush.msra.mxu1 %v59_v3  ;;  %v55_v11 = vld [vmem:[#allocation2 + $0xd0] sm:$0xff]  ;;  %v38_v12 = vld [vmem:[#allocation2 + $0x48] sm:$0xff]  ;;  %v37_v14 = vld [vmem:[#allocation2 + $0x40] sm:$0xff] }
   0xa   :  { %63 = vmatpush.msra.mxu0 %v42_v4  ;;  %v54_v13 = vld [vmem:[#allocation2 + $0xc8] sm:$0xff]  ;;  %v53_v15 = vld [vmem:[#allocation2 + $0xc0] sm:$0xff]  ;;  %v36_v16 = vld [vmem:[#allocation2 + $0x38] sm:$0xff] }
   0xb   :  { %83 = vmatpush.msra.mxu1 %v58_v5  ;;  %v52_v17 = vld [vmem:[#allocation2 + $0xb8] sm:$0xff]  ;;  %v35_v18 = vld [vmem:[#allocation2 + $0x30] sm:$0xff]  ;;  %v34_v20 = vld [vmem:[#allocation2 + $0x28] sm:$0xff] }
   0xc   :  { %64 = vmatpush.msra.mxu0 %v41_v6  ;;  %v51_v19 = vld [vmem:[#allocation2 + $0xb0] sm:$0xff]  ;;  %v50_v21 = vld [vmem:[#allocation2 + $0xa8] sm:$0xff]  ;;  %v33_v22 = vld [vmem:[#allocation2 + $0x20] sm:$0xff] }
   0xd   :  { %84 = vmatpush.msra.mxu1 %v57_v7  ;;  %v49_v23 = vld [vmem:[#allocation2 + $0xa0] sm:$0xff]  ;;  %v32_v24 = vld [vmem:[#allocation2 + $0x18] sm:$0xff]  ;;  %v31_v26 = vld [vmem:[#allocation2 + $0x10] sm:$0xff] }
   0xe   :  { %65 = vmatpush.msra.mxu0 %v40_v8  ;;  %v48_v25 = vld [vmem:[#allocation2 + $0x98] sm:$0xff]  ;;  %v47_v27 = vld [vmem:[#allocation2 + $0x90] sm:$0xff]  ;;  %v30_v28 = vld [vmem:[#allocation2 + $0x8] sm:$0xff] }
   0xf   :  { %85 = vmatpush.msra.mxu1 %v56_v9  ;;  %v46_v29 = vld [vmem:[#allocation2 + $0x88] sm:$0xff]  ;;  %v29_v30 = vld [vmem:[#allocation2] sm:$0xff] }
  0x10   :  { %66 = vmatpush.msra.mxu0 %v39_v10  ;;  %v45_v31 = vld [vmem:[#allocation2 + $0x80] sm:$0xff]  ;;  %v28_v33 = vld [vmem:[%s167_s0 + $0x8] sm:$0xff] }
  0x11   :  { %86 = vmatpush.msra.mxu1 %v55_v11  ;;  %v27_v32 = vld [vmem:[%s167_s0] sm:$0xff] }
  0x12   :  { %67 = vmatpush.msra.mxu0 %v38_v12 }
  0x13   :  { %87 = vmatpush.msra.mxu1 %v54_v13 }
  0x14   :  { %68 = vmatpush.msra.mxu0 %v37_v14 }
  0x15   :  { %88 = vmatpush.msra.mxu1 %v53_v15 }
  0x16   :  { %69 = vmatpush.msra.mxu0 %v36_v16 }
  0x17   :  { %89 = vmatpush.msra.mxu1 %v52_v17 }
  0x18   :  { %70 = vmatpush.msra.mxu0 %v35_v18 }
  0x19   :  { %90 = vmatpush.msra.mxu1 %v51_v19 }
  0x1a   :  { %71 = vmatpush.msra.mxu0 %v34_v20 }
  0x1b   :  { %91 = vmatpush.msra.mxu1 %v50_v21 }
  0x1c   :  { %72 = vmatpush.msra.mxu0 %v33_v22 }
  0x1d   :  { %92 = vmatpush.msra.mxu1 %v49_v23 }
  0x1e   :  { %73 = vmatpush.msra.mxu0 %v32_v24 }
  0x1f   :  { %93 = vmatpush.msra.mxu1 %v48_v25 }
  0x20   :  { %74 = vmatpush.msra.mxu0 %v31_v26 }
  0x21   :  { %94 = vmatpush.msra.mxu1 %v47_v27 }
  0x22   :  { %75 = vmatpush.msra.mxu0 %v30_v28 }
  0x23   :  { %95 = vmatpush.msra.mxu1 %v46_v29 }
  0x24   :  { %76 = vmatpush.msra.mxu0 %v29_v30 }
  0x25   :  { %96 = vmatpush.msra.mxu1 %v45_v31  ;;  %77 = vmatmul.f32.vlgmr.msra.gmra.mxu0 %v27_v32 }
  0x26   :  { %97 = vmatmul.f32.vlgmr.msra.gmra.mxu1 %v28_v33 }
  0xa2   :  { %v78_v34 = vpop.f32.mrf.mxu0 }
  0xa3   :  { %v98_v35 = vpop.f32.mrf.mxu1 }
  0xa4   :  { %v99_v36 = vadd.f32 %v98_v35, %v78_v34 }
  0xa6   :  { %102 = vst.msk [vmem:[%s169_s2] sm:$0xff] %vm101_vm0, %v99_v36 }
  0xa7   :  { %107 = vsyncpa [#allocation3], 1 }

</bundles_post_ra>
